<compile_context>
chip_gen: v5e
topology: v5e:2x2
jax: 0.10.0
libtpu: 0.0.40
codegen_flags: <defaults>
</compile_context>

<pallas_src>
import jax
import jax.numpy as jnp
from jax.experimental import pallas as pl
from jax.experimental.pallas import tpu as pltpu


_LANE = 128
_SUBLANE = 8
_OUT_BUFFERS = 3             # deeper buffering on the K-times-larger write stream
_PALLAS_MIN_BYTES = 1 << 20  # below this total traffic, XLA concat wins (launch overhead)


def _lowering_kernel(x_ref, o_ref):
    # x_ref : (1, tile_rows, 128)       flattened input tile
    # o_ref : (1, K, tile_rows, 128)    K stacked copies ("stack" channel layout)
    # `parallelized(input, k)` placeholder == identity (abstract in BaseLowering).
    v = x_ref[...]                      # single load, reused for all K stores
    k_total = o_ref.shape[1]
    for fk in range(k_total):           # K is small & static -> fully unrolled
        o_ref[:, fk, :, :] = v


def _vmem_budget_bytes():
    """Per-generation budget for all live pipeline buffers + physical VMEM capacity."""
    try:
        cap = int(pltpu.get_tpu_info().vmem_capacity_bytes)
    except Exception:
        cap = 64 << 20                  # conservative default: v7x per-TensorCore VMEM
    budget = max(4 << 20, min(cap - (16 << 20), 96 << 20))   # leave Mosaic headroom
    return budget, cap


def _choose_tile_rows(n_rows, k, itemsize, vmem_budget, batch):
    """tile_rows: multiple of 8 (or full extent), VMEM-budgeted, grid-floor capped."""
    if n_rows <= _SUBLANE:
        return n_rows
    # Buffered bytes per row of 128 lanes: 2 input buffers + _OUT_BUFFERS * K output buffers.
    per_row_bytes = (2 + _OUT_BUFFERS * k) * _LANE * itemsize
    cap_rows = max(_SUBLANE, (vmem_budget // per_row_bytes) // _SUBLANE * _SUBLANE)
    tile = n_rows if cap_rows >= n_rows else cap_rows
    # Keep >= ~8 total grid steps (>=4 per v7x TensorCore; keeps DMAs overlapped).
    tiles_needed = -(-8 // max(1, batch))        # cdiv(8, batch)
    if tiles_needed > 1 and n_rows >= tiles_needed * _SUBLANE:
        grid_cap = max(_SUBLANE, (n_rows // tiles_needed) // _SUBLANE * _SUBLANE)
        tile = min(tile, grid_cap)
    return tile


def base_lowering_forward(x, f_kernel_size, anchor=1, groups=1, use_pallas=None):
    """Pallas implementation of BaseLowering.forward (groups == 1, 'stack' layout).

    x: (batch, in_channels, f, t) -> (batch, in_channels * f_kernel_size, f, t)
    """
    assert groups == 1, "only the 'stack' channel layout (groups == 1) is implemented"
    del anchor  # only used by concrete subclasses' `parallelized`

    B, C, F, T = x.shape
    K = int(f_kernel_size)
    itemsize = jnp.dtype(x.dtype).itemsize
    M = C * F * T
    total_bytes = (1 + K) * B * M * itemsize     # 1 read + K writes of the payload

    aligned = (M % _LANE == 0)
    if use_pallas is None:
        use_pallas = aligned and total_bytes >= _PALLAS_MIN_BYTES
    if not use_pallas or not aligned:
        # Tiny inputs (launch-overhead bound) or non-128-aligned payloads: let XLA fuse it.
        # TODO(synk): pad C*F*T to a multiple of 128 upstream if such shapes ever get large.
        return jnp.concatenate([x] * K, axis=1)

    N = M // _LANE
    budget, vmem_cap = _vmem_budget_bytes()
    tile_rows = _choose_tile_rows(N, K, itemsize, budget, B)
    grid = (B, pl.cdiv(N, tile_rows))            # ragged last block is masked by Pallas

    xf = x.reshape(B, N, _LANE)                  # metadata-only, lane-dense flat view

    block_bytes = (2 + _OUT_BUFFERS * K) * tile_rows * _LANE * itemsize
    vmem_limit = int(max(16 << 20,
                         min(vmem_cap - (4 << 20),
                             max(32 << 20, block_bytes + (8 << 20)))))

    cost = pl.CostEstimate(flops=0, transcendentals=0, bytes_accessed=int(total_bytes))
    params = pltpu.CompilerParams(
        dimension_semantics=("parallel", "parallel"),
        vmem_limit_bytes=vmem_limit,
    )
    in_spec = pl.BlockSpec((1, tile_rows, _LANE), lambda b, j: (b, j, 0))

    def _run(out_buffers):
        if out_buffers > 2:
            out_spec = pl.BlockSpec((1, K, tile_rows, _LANE), lambda b, j: (b, 0, j, 0),
                                    pipeline_mode=pl.Buffered(out_buffers))
        else:
            out_spec = pl.BlockSpec((1, K, tile_rows, _LANE), lambda b, j: (b, 0, j, 0))
        return pl.pallas_call(
            _lowering_kernel,
            out_shape=jax.ShapeDtypeStruct((B, K, N, _LANE), x.dtype),
            grid_spec=pltpu.PrefetchScalarGridSpec(
                num_scalar_prefetch=0,
                grid=grid,
                in_specs=[in_spec],
                out_specs=out_spec,
            ),
            compiler_params=params,
            cost_estimate=cost,
        )(xf)

    try:
        out = _run(_OUT_BUFFERS)     # triple-buffered output: write stream is the long pole
    except Exception:
        out = _run(2)                # pipeline_mode unsupported -> default double buffering

    # (B, K, N, 128) == (B, K, C*F*T) contiguous -> (B, K*C, F, T): metadata-only reshape.
    return out.reshape(B, K * C, F, T)


def base_lowering_reference(x, f_kernel_size):
    """Pure-JAX reference: stack K identity 'parallelized' copies along channels."""
    return jnp.concatenate([x for _ in range(f_kernel_size)], axis=1)


if __name__ == "__main__":
    key = jax.random.PRNGKey(0)
    k_a, k_b = jax.random.split(key)

    # 1) Small shape consistent with the module: input (batch, in_channels, f, t).
    batch, in_channels, f, t = 2, 4, 16, 16
    f_kernel_size = 3
    x = jax.random.normal(k_a, (batch, in_channels, f, t), dtype=jnp.float32)
    ref = base_lowering_reference(x, f_kernel_size)
    out = jax.block_until_ready(
        base_lowering_forward(x, f_kernel_size, anchor=1, groups=1, use_pallas=True))
    assert out.shape == (batch, in_channels * f_kernel_size, f, t), out.shape
    assert out.dtype == x.dtype
    assert jnp.array_equal(out, ref), "Pallas output mismatch vs reference (case 1)"

    # 2) Shape exercising the budget/grid-floor tiler and the ragged (masked) last block:
    #    N = C*F*T/128 = 36 rows -> tile_rows = 8, grid (2, 5) with a 4-row ragged tail.
    b2, c2, f2, t2, k2 = 2, 4, 36, 32, 2
    x2 = jax.random.normal(k_b, (b2, c2, f2, t2), dtype=jnp.float32)
    ref2 = base_lowering_reference(x2, k2)
    out2 = jax.block_until_ready(
        base_lowering_forward(x2, k2, anchor=1, groups=1, use_pallas=True))
    assert out2.shape == (b2, c2 * k2, f2, t2), out2.shape
    assert jnp.array_equal(out2, ref2), "Pallas output mismatch vs reference (case 2)"

    # 3) Auto-dispatch (size/alignment-gated XLA fallback) must agree as well.
    out_auto = jax.block_until_ready(
        base_lowering_forward(x, f_kernel_size, anchor=1, groups=1))
    assert jnp.array_equal(out_auto, ref), "auto-dispatch output mismatch vs reference"

    print("KERNEL_OK")
</pallas_src>

<mosaic_0001>
module attributes {stable_mosaic.version = 11 : i64} {
  func.func @_lowering_kernel(%arg0: i32, %arg1: i32, %arg2: memref<1x8x128xf32, #tpu.memory_space<vmem>>, %arg3: memref<1x3x8x128xf32, #tpu.memory_space<vmem>>) attributes {dimension_semantics = [#tpu.dimension_semantics<parallel>, #tpu.dimension_semantics<parallel>], iteration_bounds = array<i64: 2, 1>, scalar_prefetch = 0 : i64, scratch_operands = 0 : i64, tpu.core_type = #tpu.core_type<tc>, window_params = [{transform_indices = @transform_0, window_bounds = array<i64: 1, 8, 128>}, {transform_indices = @transform_1, window_bounds = array<i64: 1, 3, 8, 128>}]} {
    %c0 = arith.constant 0 : index
    %c0_0 = arith.constant 0 : index
    %c0_1 = arith.constant 0 : index
    %0 = vector.load %arg2[%c0, %c0_0, %c0_1] : memref<1x8x128xf32, #tpu.memory_space<vmem>>, vector<1x8x128xf32>
    %c0_2 = arith.constant 0 : index
    %c0_3 = arith.constant 0 : index
    %c0_4 = arith.constant 0 : index
    %c0_5 = arith.constant 0 : index
    %1 = vector.load %arg3[%c0_2, %c0_3, %c0_4, %c0_5] : memref<1x3x8x128xf32, #tpu.memory_space<vmem>>, vector<1x1x8x128xf32>
    %2 = vector.shape_cast %1 : vector<1x1x8x128xf32> to vector<1x8x128xf32>
    %3 = vector.shape_cast %0 : vector<1x8x128xf32> to vector<1x1x8x128xf32>
    tpu.vector_store %arg3[%c0_2, %c0_3, %c0_4, %c0_5], %3 {strides = array<i32>} : memref<1x3x8x128xf32, #tpu.memory_space<vmem>>, vector<1x1x8x128xf32>,
    %c0_6 = arith.constant 0 : index
    %c1 = arith.constant 1 : index
    %c0_7 = arith.constant 0 : index
    %c0_8 = arith.constant 0 : index
    %4 = vector.load %arg3[%c0_6, %c1, %c0_7, %c0_8] : memref<1x3x8x128xf32, #tpu.memory_space<vmem>>, vector<1x1x8x128xf32>
    %5 = vector.shape_cast %4 : vector<1x1x8x128xf32> to vector<1x8x128xf32>
    %6 = vector.shape_cast %0 : vector<1x8x128xf32> to vector<1x1x8x128xf32>
    tpu.vector_store %arg3[%c0_6, %c1, %c0_7, %c0_8], %6 {strides = array<i32>} : memref<1x3x8x128xf32, #tpu.memory_space<vmem>>, vector<1x1x8x128xf32>,
    %c0_9 = arith.constant 0 : index
    %c2 = arith.constant 2 : index
    %c0_10 = arith.constant 0 : index
    %c0_11 = arith.constant 0 : index
    %7 = vector.load %arg3[%c0_9, %c2, %c0_10, %c0_11] : memref<1x3x8x128xf32, #tpu.memory_space<vmem>>, vector<1x1x8x128xf32>
    %8 = vector.shape_cast %7 : vector<1x1x8x128xf32> to vector<1x8x128xf32>
    %9 = vector.shape_cast %0 : vector<1x8x128xf32> to vector<1x1x8x128xf32>
    tpu.vector_store %arg3[%c0_9, %c2, %c0_10, %c0_11], %9 {strides = array<i32>} : memref<1x3x8x128xf32, #tpu.memory_space<vmem>>, vector<1x1x8x128xf32>,
    return
  }
  func.func @transform_0(%arg0: i32, %arg1: i32) -> (i32, i32, i32) {
    %c0_i32 = arith.constant 0 : i32
    %c0_i32_0 = arith.constant 0 : i32
    return %arg0, %arg1, %c0_i32 : i32, i32, i32
  }
  func.func @transform_1(%arg0: i32, %arg1: i32) -> (i32, i32, i32, i32) {
    %c0_i32 = arith.constant 0 : i32
    %c0_i32_0 = arith.constant 0 : i32
    %c0_i32_1 = arith.constant 0 : i32
    return %arg0, %c0_i32, %arg1, %c0_i32_0 : i32, i32, i32, i32
  }
}

</mosaic_0001>

<bundles_post_ra>
// kernel: tpu_custom_call.1
= control target key start
LH: loop header
LB: loop body
LE: loop exit
PB: predicated region body
PF: predicated region fallthrough
CT: control target
= control target key end

     0   :  { %6 = vsyncpa [#allocation3], 0  ;;  %s584_s0 = inlined_call_operand.hbm [shape: f32[2,8,128], index: 0, kind: input, shape index: {}]   ;;  %s585_s1 = inlined_call_operand.hbm [shape: f32[2,3,8,128], index: 1, kind: output, shape index: {}]  }
   0x1   :  { %8 = vsyncpa [#allocation3 + $0x1], 0 }
   0x2   :  { %9 = vsyncpa [#allocation4], 0 }
   0x3   :  { %11 = vsyncpa [#allocation4 + $0x1], 0  ;;  %s463_s6 = smov 0   ;;  %s465_s7 = smov 0  }
   0x4   :  { %s467_s8 = smov 0   ;;  %s469_s9 = smov 0  }
   0x5   :  { %s471_s10 = smov 0   ;;  %s473_s11 = smov 0  }
   0x6 LB: > { %s258_s12 = sadd.s32 4294967295, %s449_s11   ;;  %s259_s13 = sadd.s32 4294967294, %s449_s11   ;;  %s449_s11 = sphi %s473_s11, %s17_s11   ;;  %s445_s10 = sphi %s471_s10, %s594_s10   ;;  %s441_s9 = sphi %s469_s9, %s593_s9   ;;  %s437_s8 = sphi %s467_s8, %s592_s8   ;;  %s433_s7 = sphi %s465_s7, %s591_s7   ;;  %s429_s6 = sphi %s463_s6, %s590_s6  }
   0x7   : > { %s29_s14 = sadd.s32 1, %s445_s10  ;;  %s38_s15 = sadd.s32 1, %s437_s8 }
   0x8   : > { %p31_p0 = scmp.ge.s32.totalorder %s29_s14, 2  ;;  %p45_p1 = scmp.ne.s32.totalorder %s437_s8, %s433_s7 }
   0x9   : > { %p46_p2 = scmp.eq.s32.totalorder %s449_s11, 0  ;;  %p51_p3 = scmp.ne.s32.totalorder %s433_s7, %s429_s6 }
   0xa   : > { %s596_s14 = smov (%p31_p0, %s29_s14), 0  ;;  %p52_p5 = scmp.eq.s32.totalorder %s258_s12, 0 }
   0xb   : > { %p504_p4 = por %p46_p2, %p45_p1  ;;  %s33_s17 = ssub.s32 %s445_s10, %s596_s14 }
   0xc   : > { %p77_p6 = scmp.eq.s32.totalorder %s258_s12, 1  ;;  %p36_p7 = scmp.eq.s32.totalorder %s33_s17, 0 }
   0xd   : > { %p510_p8 = por %p52_p5, %p51_p3  ;;  %p83_p10 = scmp.eq.s32.totalorder %s259_s13, 1 }
   0xe   : > { %p514_p9 = por %p77_p6, %p45_p1  ;;  %p261_p12 = scmp.ge.s32.totalorder %s449_s11, 2 }
   0xf   : > { %s519_s20 = scalar_select %p36_p7, %s437_s8, %s38_s15  }
  0x10   : > { %p521_p11 = por %p83_p10, %p51_p3  ;;  %p285_p13 = scmp.lt.s32.totalorder %s449_s11, 2 }
  0x11   : > { %s103_s22 = sand.u32 1, %s437_s8   ;;  %s263_s24 = sshll.u32 %s445_s10, 3 }
  0x12   : > { %s262_s23 = sshll.u32 %s103_s22, 3  ;;  %s112_s27 = scalar_lea.hbm %s584_s0, %s263_s24 }
  0x13   : > { %s107_s28 = scalar_lea.vmem [#allocation2], %s262_s23  ;;  %s114_s30 = sshll.u32 %s112_s27, 4  ;;  %s115_s30 = int_to_ptr.hbm [resolvable:$true] %s114_s30 }
  0x14   : > { %s116_s29 = sshll.u32 %s107_s28, 4  ;;  %p278_p0 = pnand %p285_p13, %p504_p4  ;;  %s117_s29 = int_to_ptr.vmem [resolvable:$true] %s116_s29 }
  0x15   : > { %p264_p1 = scmp.ge.s32.totalorder %s449_s11, 1  ;;  %p121_p2 = scmp.lt.s32.totalorder %s449_s11, 3 }
  0x16   : > { %s104_s2 = scalar_lea.sflag [#allocation3], %s103_s22 }
  0x17   : > { %280 = dma.hbm_to_vmem [thread:$0]  (!%p278_p0), %s115_s30, 128, %s117_s29, %s104_s2  }
  0x18   : > { %p122_p3 = pnand %p264_p1, %p121_p2 }
  0x19   : > { %s537_s3 = sand.u32 (!%p122_p3), 1, %s433_s7  }
  0x1a   : > { %125 = sbr.rel (%p122_p3) target bundleno = 50 (0x32), region = 24  ;;  %s265_s4 = sshll.u32 (!%p122_p3), %s537_s3, 3 }
  0x1b   : > { %s128_s5 = scalar_lea.sflag (!%p122_p3), [#allocation3], %s537_s3  ;;  %s131_s12 = scalar_lea.vmem (!%p122_p3), [#allocation2], %s265_s4 }
  0x1f   : > { %420 = dma.done.wait (%p510_p8), %s128_s5, 128  }
  0x20   : > { %422 = vsyncadd (%p510_p8), %s128_s5, 4294967168  ;;  %s271_s13 = smul.u32 24, %s537_s3  ;;  %v151_v0 = vld [vmem:[%s131_s12] sm:$0xff]  ;;  %s158_s18 = scalar_lea.sflag [#allocation4], %s537_s3 }
  0x21   : > { %s272_s15 = smul.u32 24, %s441_s9  ;;  %s387_s29 = scalar_lea.hbm %s585_s1, 48 }
  0x22   : > { %s150_s23 = scalar_lea.vmem [#allocation5], %s271_s13 }
  0x23   : > { %s170_s22 = scalar_lea.hbm %s585_s1, %s272_s15  ;;  %s171_s24 = sshll.u32 %s150_s23, 4  ;;  %152 = vst [vmem:[%s150_s23] sm:$0xff] %v151_v0  ;;  %s172_s24 = int_to_ptr.vmem [resolvable:$true] %s171_s24 }
  0x24   : > { %s173_s25 = sshll.u32 %s170_s22, 4  ;;  %266 = vst [vmem:[%s150_s23 + $0x8] sm:$0xff] %v151_v0  ;;  %s174_s25 = int_to_ptr.hbm [resolvable:$true] %s173_s25 }
  0x25   : > { %267 = vst [vmem:[%s150_s23 + $0x10] sm:$0xff] %v151_v0  ;;  %s381_s26 = sshra.s32 %s174_s25, 4  ;;  %s382_s26 = int_to_ptr.hbm [resolvable:$true] %s381_s26 }
  0x26   : > { %s383_s27 = scalar_lea.hbm %s382_s26, 24  ;;  %p388_p7 = scmp.lt.s32.totalorder %s382_s26, %s585_s1 }
  0x27   : > { %p384_p4 = scmp.ne.s32.totalorder %s382_s26, %s383_s27  ;;  %p389_p8 = scmp.lt.s32.totalorder %s387_s29, %s383_s27 }
  0x29   : > { %p385_p5 = pnand %p384_p4, %p514_p9  ;;  %p390_p10 = por %p389_p8, %p388_p7 }
  0x2b   : > { %p386_p6 = pneg %p385_p5 }
  0x2d   : > { %p391_p13 = pnand %p390_p10, %p386_p6 }
  0x2f   : > { %394 = shalt.err (!%p391_p13)
}
  0x30   : > { %s451_s3 = smov 128   ;;  %s452_s4 = smov 8  }
  0x31   : > { %275 = dma.vmem_to_hbm [thread:$0]  (%p514_p9), %s172_s24, 384, %s174_s25, %s158_s18, %s451_s3, %s451_s3, %s452_s4  }
  0x32 PF: > { %s188_s5 = sand.u32 1, %s429_s6   ;;  %p282_p0 = pnand %p261_p12, %p521_p11 }
  0x33   : > { %s189_s12 = scalar_lea.sflag [#allocation4], %s188_s5 }
  0x34   : > { %p283_p1 = pneg %p282_p0 }
  0x36   : > { %424 = dma.done.wait (%p283_p1), %s189_s12, 384  }
  0x37   : > { %426 = vsyncadd (%p283_p1), %s189_s12, 4294966912  ;;  %s17_s11 = sadd.s32 1, %s449_s11   ;;  %s590_s6 = smov %s433_s7 }
  0x38   : > { %p14_p2 = scmp.ge.s32.totalorder %s17_s11, 4   ;;  %s591_s7 = smov %s437_s8 }
  0x39   : > { %s592_s8 = smov %s519_s20  ;;  %s593_s9 = smov %s445_s10 }
  0x3a   : > { %s594_s10 = smov %s596_s14  ;;  %16 = sbr.rel (!%p14_p2) target bundleno = 6 (0x6), region = 71 }
  0x3f   :  { %195 = vsyncpa [#allocation3], 1 }
  0x40   :  { %197 = vsyncpa [#allocation3 + $0x1], 1 }
  0x41   :  { %198 = vsyncpa [#allocation4], 1 }
  0x42   :  { %200 = vsyncpa [#allocation4 + $0x1], 1 }

</bundles_post_ra>
